<compile_context>
chip_gen: v7x
topology: tpu7x:2x2x1
jax: 0.10.0
libtpu: 0.0.40
codegen_flags: <defaults>
</compile_context>

<pallas_src>
import jax
import jax.numpy as jnp
from jax.experimental import pallas as pl
from jax.experimental.pallas import tpu as pltpu

# ----------------------------- hyperparameters ------------------------------
IN_CHANNELS = 4     # in_channels
L_IN        = 16    # L_in  (must be divisible by 4 for depth=2)
N_FILTERS   = 32    # n_filters
N_NEURONS   = 32    # n_neurons
FILTER_SIZE = 3     # filter_size (padding = 1)
BATCH       = 2

L_HALF   = L_IN // 2
L_QUART  = L_IN // 4
FLAT_DIM = L_QUART * N_FILTERS


# ----------------------------- fused forward kernel -------------------------
def _fused_cnn_kernel(x_ref, w1_ref, b1_ref, w2_ref, b2_ref,
                      fw1_ref, fb1_ref, fw2_ref, fb2_ref, o_ref):
    """Whole CNN_V3(depth=2) forward for one batch tile in one grid point.

    All intermediates live in vregs; each conv layer is a single MXU matmul.
    """
    tb, l_in, c_in = x_ref.shape
    f = b1_ref.shape[1]
    l_half = l_in // 2
    l_quart = l_in // 4

    def taps(a, rows_per_sample):
        """Lane-concat [a[r-1], a[r], a[r+1]] with zero rows at sample edges.

        Rows are (sample, position) flattened; rolls wrap across samples but
        the iota mask zeroes exactly the rows that correspond to the conv's
        zero padding, so no physical padded copy is needed.
        """
        m = a.shape[0]
        pos = jax.lax.broadcasted_iota(jnp.int32, (m, 1), 0) % rows_per_sample
        prev = pltpu.roll(a, shift=1, axis=0)            # row r <- a[r-1]
        prev = jnp.where(pos == 0, 0.0, prev)            # left zero pad
        nxt = pltpu.roll(a, shift=m - 1, axis=0)         # row r <- a[r+1]
        nxt = jnp.where(pos == rows_per_sample - 1, 0.0, nxt)  # right zero pad
        return jnp.concatenate([prev, a, nxt], axis=1)   # (m, 3*C)

    def maxpool2(a):
        # Pairs consecutive rows (never crosses a sample boundary for even L).
        m, c = a.shape
        return jnp.max(a.reshape(m // 2, 2, c), axis=1)

    # ------------- conv1 (k=3, pad=1) + ReLU + MaxPool1d(2, 2) --------------
    x_flat = x_ref[...].reshape(tb * l_in, c_in)                   # (M1, C_in)
    h = jnp.dot(taps(x_flat, l_in), w1_ref[...],
                preferred_element_type=jnp.float32)                # (M1, F)
    h = jnp.maximum(h + b1_ref[...], 0.0)
    h = maxpool2(h)                                                # (M2, F)

    # ------------- conv2 (k=3, pad=1) + ReLU + MaxPool1d(2, 2) --------------
    h2 = jnp.dot(taps(h, l_half), w2_ref[...],
                 preferred_element_type=jnp.float32)               # (M2, F)
    h2 = jnp.maximum(h2 + b2_ref[...], 0.0)
    h2 = maxpool2(h2)                                              # (M3, F)

    # ------- flatten + fc1 + ReLU (dropout: identity in eval mode) ----------
    # fw1 rows are pre-permuted to (l*F + f) order, so the torch channel-major
    # flatten is a plain lane-axis concat of the L/4 row groups: one K=128 dot.
    h3 = h2.reshape(tb, l_quart, f)
    zin = jnp.concatenate([h3[:, l, :] for l in range(l_quart)], axis=1)
    z = jnp.dot(zin, fw1_ref[...], preferred_element_type=jnp.float32)
    z = jnp.maximum(z + fb1_ref[...], 0.0)                         # (tb, H)

    # ------------------ fc2 (H -> 1) + sigmoid -------------------------------
    # width-1 projection as VPU multiply + cross-lane reduction (no MXU matmul)
    y = jnp.sum(z * fw2_ref[...], axis=-1, keepdims=True) + fb2_ref[...]
    o_ref[...] = jax.nn.sigmoid(y)


# ------------------------------ wrapper --------------------------------------
def cnn_v3_forward(x, params, *, batch_tile=None):
    """x: (N, L_in, C_in) — same as the PyTorch module's input (pre-transpose).

    `params` must be the prepared layout from prepare_params().
    """
    n, l_in, c_in = x.shape
    assert l_in % 4 == 0, "depth=2 CNN_V3 needs L_in divisible by 4"
    f = params["b1"].shape[1]
    h_neurons = params["fb1"].shape[1]
    k_c1 = params["w1"].shape[0]      # 3 * c_in
    k_c2 = params["w2"].shape[0]      # 3 * f
    flat = params["fw1"].shape[0]     # (l_in // 4) * f

    if batch_tile is None:
        # Fill the MXU M dimension when the batch allows it; weights stay
        # resident across grid steps (constant index_maps).
        batch_tile = 16 if (n % 16 == 0) else n
    assert n % batch_tile == 0, "batch must be divisible by batch_tile"

    return pl.pallas_call(
        _fused_cnn_kernel,
        out_shape=jax.ShapeDtypeStruct((n, 1), jnp.float32),
        grid=(n // batch_tile,),
        in_specs=[
            pl.BlockSpec((batch_tile, l_in, c_in), lambda i: (i, 0, 0)),  # x
            pl.BlockSpec((k_c1, f), lambda i: (0, 0)),                    # w1cat
            pl.BlockSpec((1, f), lambda i: (0, 0)),                       # b1
            pl.BlockSpec((k_c2, f), lambda i: (0, 0)),                    # w2cat
            pl.BlockSpec((1, f), lambda i: (0, 0)),                       # b2
            pl.BlockSpec((flat, h_neurons), lambda i: (0, 0)),            # fw1 flat
            pl.BlockSpec((1, h_neurons), lambda i: (0, 0)),               # fb1
            pl.BlockSpec((1, h_neurons), lambda i: (0, 0)),               # fw2 (row)
            pl.BlockSpec((1, 1), lambda i: (0, 0)),                       # fb2
        ],
        out_specs=pl.BlockSpec((batch_tile, 1), lambda i: (i, 0)),
        compiler_params=pltpu.CompilerParams(
            dimension_semantics=("parallel",)),   # shards batch tiles on v7x
    )(x, params["w1"], params["b1"], params["w2"], params["b2"],
      params["fw1"], params["fb1"], params["fw2"], params["fb2"])


# ------------------------------ parameters ------------------------------------
def init_params(key):
    """Deterministic synthetic parameters matching CNN_V3(depth=2) shapes.

    Layout vs. torch:
      conv weights:  (K, C_in, C_out)  == torch (C_out, C_in, K) transposed
      fc1 weight:    (flat_dim, H) with rows indexed channel-major (f*L/4 + l),
                     i.e. transposed torch fc1.weight with torch's .view order
      fc2 weight:    (1, H)            == torch fc2.weight
    """
    k = jax.random.split(key, 8)
    scale = 0.1
    return {
        "w1": scale * jax.random.normal(k[0], (FILTER_SIZE, IN_CHANNELS, N_FILTERS), jnp.float32),
        "b1": scale * jax.random.normal(k[1], (1, N_FILTERS), jnp.float32),
        "w2": scale * jax.random.normal(k[2], (FILTER_SIZE, N_FILTERS, N_FILTERS), jnp.float32),
        "b2": scale * jax.random.normal(k[3], (1, N_FILTERS), jnp.float32),
        "fw1": scale * jax.random.normal(k[4], (FLAT_DIM, N_NEURONS), jnp.float32),
        "fb1": scale * jax.random.normal(k[5], (1, N_NEURONS), jnp.float32),
        "fw2": scale * jax.random.normal(k[6], (1, N_NEURONS), jnp.float32),
        "fb2": scale * jax.random.normal(k[7], (1, 1), jnp.float32),
    }


def prepare_params(params):
    """One-time weight re-layout (init/trace time, NOT per forward):

      * conv weights are flattened along K so each conv layer is a single
        MXU matmul against the lane-concatenated 3-tap activation
        (rows indexed k*C_in + c  /  k*F + f).
      * fc1 rows are permuted from torch's channel-major flatten (f*L/4 + l)
        to the kernel's length-major concat order (l*F + f), giving one
        (N, 128) @ (128, H) matmul with no runtime transpose.
    """
    out = dict(params)
    out["w1"] = params["w1"].reshape(FILTER_SIZE * IN_CHANNELS, N_FILTERS)
    out["w2"] = params["w2"].reshape(FILTER_SIZE * N_FILTERS, N_FILTERS)
    fw1 = params["fw1"].reshape(N_FILTERS, L_QUART, N_NEURONS)       # [f, l, h]
    fw1 = jnp.transpose(fw1, (1, 0, 2)).reshape(FLAT_DIM, N_NEURONS)  # [l*F+f, h]
    out["fw1"] = fw1
    return out


# --------------------------- pure-JAX reference -------------------------------
def reference_forward(x, raw):
    """Torch-mirroring reference using the RAW (un-prepared) parameter layout."""
    n, l, _ = x.shape
    l2, l4 = l // 2, l // 4
    # conv1 + ReLU + pool
    xp = jnp.pad(x, ((0, 0), (1, 1), (0, 0)))
    h = sum(jnp.einsum("nlc,cf->nlf", xp[:, k:k + l, :], raw["w1"][k])
            for k in range(FILTER_SIZE)) + raw["b1"][0]
    h = jnp.maximum(h, 0.0)
    h = jnp.max(h.reshape(n, l2, 2, -1), axis=2)
    # conv2 + ReLU + pool
    hp = jnp.pad(h, ((0, 0), (1, 1), (0, 0)))
    h2 = sum(jnp.einsum("nlf,fg->nlg", hp[:, k:k + l2, :], raw["w2"][k])
             for k in range(FILTER_SIZE)) + raw["b2"][0]
    h2 = jnp.maximum(h2, 0.0)
    h2 = jnp.max(h2.reshape(n, l4, 2, -1), axis=2)
    # torch channel-major flatten + fc1 + ReLU + fc2 + sigmoid
    flat = jnp.transpose(h2, (0, 2, 1)).reshape(n, -1)
    z = jnp.maximum(flat @ raw["fw1"] + raw["fb1"][0], 0.0)
    return jax.nn.sigmoid(z @ raw["fw2"].T + raw["fb2"][0])


if __name__ == "__main__":
    key = jax.random.PRNGKey(0)
    pkey, xkey, xkey2 = jax.random.split(key, 3)
    raw_params = init_params(pkey)
    params = prepare_params(raw_params)     # one-time re-layout, outside jit

    fwd = jax.jit(cnn_v3_forward)

    # input matches the PyTorch module input: (batch, L_in, in_channels)
    x = jax.random.normal(xkey, (BATCH, L_IN, IN_CHANNELS), jnp.float32)
    out = jax.block_until_ready(fwd(x, params))
    assert out.shape == (BATCH, 1)
    assert bool(jnp.all((out >= 0.0) & (out <= 1.0)))
    assert bool(jnp.allclose(out, reference_forward(x, raw_params),
                             atol=1e-3, rtol=1e-3))

    # larger batch exercises the batch-tiled grid (2 tiles of 16) and the
    # "parallel" megacore split on v7x
    xb = jax.random.normal(xkey2, (32, L_IN, IN_CHANNELS), jnp.float32)
    outb = jax.block_until_ready(fwd(xb, params))
    assert outb.shape == (32, 1)
    assert bool(jnp.allclose(outb, reference_forward(xb, raw_params),
                             atol=1e-3, rtol=1e-3))

    print("KERNEL_OK")
</pallas_src>

<mosaic_0001>
module attributes {stable_mosaic.version = 11 : i64} {
  func.func @_fused_cnn_kernel(%arg0: i32, %arg1: memref<2x16x4xf32, #tpu.memory_space<vmem>>, %arg2: memref<12x32xf32, #tpu.memory_space<vmem>>, %arg3: memref<1x32xf32, #tpu.memory_space<vmem>>, %arg4: memref<96x32xf32, #tpu.memory_space<vmem>>, %arg5: memref<1x32xf32, #tpu.memory_space<vmem>>, %arg6: memref<128x32xf32, #tpu.memory_space<vmem>>, %arg7: memref<1x32xf32, #tpu.memory_space<vmem>>, %arg8: memref<1x32xf32, #tpu.memory_space<vmem>>, %arg9: memref<1x1xf32, #tpu.memory_space<vmem>>, %arg10: memref<2x1xf32, #tpu.memory_space<vmem>>) attributes {dimension_semantics = [#tpu.dimension_semantics<parallel>], iteration_bounds = array<i64: 1>, scalar_prefetch = 0 : i64, scratch_operands = 0 : i64, tpu.core_type = #tpu.core_type<tc>, window_params = [{transform_indices = @transform_0, window_bounds = array<i64: 2, 16, 4>}, {pipeline_mode = #tpu.pipeline_mode<synchronous>, transform_indices = @transform_1, window_bounds = array<i64: 12, 32>}, {pipeline_mode = #tpu.pipeline_mode<synchronous>, transform_indices = @transform_2, window_bounds = array<i64: 1, 32>}, {pipeline_mode = #tpu.pipeline_mode<synchronous>, transform_indices = @transform_3, window_bounds = array<i64: 96, 32>}, {pipeline_mode = #tpu.pipeline_mode<synchronous>, transform_indices = @transform_4, window_bounds = array<i64: 1, 32>}, {pipeline_mode = #tpu.pipeline_mode<synchronous>, transform_indices = @transform_5, window_bounds = array<i64: 128, 32>}, {pipeline_mode = #tpu.pipeline_mode<synchronous>, transform_indices = @transform_6, window_bounds = array<i64: 1, 32>}, {pipeline_mode = #tpu.pipeline_mode<synchronous>, transform_indices = @transform_7, window_bounds = array<i64: 1, 32>}, {pipeline_mode = #tpu.pipeline_mode<synchronous>, transform_indices = @transform_8, window_bounds = array<i64: 1, 1>}, {transform_indices = @transform_9, window_bounds = array<i64: 2, 1>}]} {
    %c0 = arith.constant 0 : index
    %c0_0 = arith.constant 0 : index
    %c0_1 = arith.constant 0 : index
    %0 = vector.load %arg1[%c0, %c0_0, %c0_1] : memref<2x16x4xf32, #tpu.memory_space<vmem>>, vector<2x16x4xf32>
    %1 = vector.shape_cast %0 : vector<2x16x4xf32> to vector<32x4xf32>
    %2 = tpu.iota {dimensions = array<i32: 0>} : vector<32x1xi32>
    %c16_i32 = arith.constant 16 : i32
    %c0_i32 = arith.constant 0 : i32
    %3 = arith.cmpi eq, %c16_i32, %c0_i32 : i32
    %c1_i32 = arith.constant 1 : i32
    %4 = arith.select %3, %c1_i32, %c16_i32 : i32
    %5 = vector.broadcast %4 : i32 to vector<32x1xi32>
    %6 = arith.remsi %2, %5 : vector<32x1xi32>
    %c0_i32_2 = arith.constant 0 : i32
    %7 = vector.broadcast %c0_i32_2 : i32 to vector<32x1xi32>
    %8 = arith.cmpi ne, %6, %7 : vector<32x1xi32>
    %c0_i32_3 = arith.constant 0 : i32
    %9 = vector.broadcast %c0_i32_3 : i32 to vector<32x1xi32>
    %10 = arith.cmpi slt, %6, %9 : vector<32x1xi32>
    %c0_i32_4 = arith.constant 0 : i32
    %11 = arith.cmpi slt, %4, %c0_i32_4 : i32
    %12 = vector.broadcast %11 : i1 to vector<32x1xi1>
    %13 = vector.broadcast %12 : vector<32x1xi1> to vector<32x1xi1>
    %14 = arith.xori %10, %13 : vector<32x1xi1>
    %15 = arith.andi %14, %8 : vector<32x1xi1>
    %16 = vector.broadcast %4 : i32 to vector<32x1xi32>
    %17 = arith.addi %6, %16 : vector<32x1xi32>
    %18 = arith.select %15, %17, %6 : vector<32x1xi1>, vector<32x1xi32>
    %c1_i32_5 = arith.constant 1 : i32
    %19 = tpu.dynamic_rotate %1 by %c1_i32_5 dim 0 : vector<32x4xf32>, i32 -> vector<32x4xf32>
    %c0_i32_6 = arith.constant 0 : i32
    %20 = vector.broadcast %c0_i32_6 : i32 to vector<32x1xi32>
    %21 = arith.cmpi eq, %18, %20 : vector<32x1xi32>
    %cst = arith.constant 0.000000e+00 : f32
    %22 = vector.shape_cast %21 : vector<32x1xi1> to vector<32x1xi1>
    %23 = vector.broadcast %22 : vector<32x1xi1> to vector<32x4xi1>
    %24 = vector.broadcast %cst : f32 to vector<32x4xf32>
    %25 = arith.select %23, %24, %19 : vector<32x4xi1>, vector<32x4xf32>
    %c31_i32 = arith.constant 31 : i32
    %26 = tpu.dynamic_rotate %1 by %c31_i32 dim 0 : vector<32x4xf32>, i32 -> vector<32x4xf32>
    %c15_i32 = arith.constant 15 : i32
    %27 = vector.broadcast %c15_i32 : i32 to vector<32x1xi32>
    %28 = arith.cmpi eq, %18, %27 : vector<32x1xi32>
    %cst_7 = arith.constant 0.000000e+00 : f32
    %29 = vector.shape_cast %28 : vector<32x1xi1> to vector<32x1xi1>
    %30 = vector.broadcast %29 : vector<32x1xi1> to vector<32x4xi1>
    %31 = vector.broadcast %cst_7 : f32 to vector<32x4xf32>
    %32 = arith.select %30, %31, %26 : vector<32x4xi1>, vector<32x4xf32>
    %33 = tpu.concatenate %25, %1, %32 in 1 : vector<32x4xf32>, vector<32x4xf32>, vector<32x4xf32> -> vector<32x12xf32>
    %c0_8 = arith.constant 0 : index
    %c0_9 = arith.constant 0 : index
    %34 = vector.load %arg2[%c0_8, %c0_9] : memref<12x32xf32, #tpu.memory_space<vmem>>, vector<12x32xf32>
    %cst_10 = arith.constant dense<0.000000e+00> : vector<32x32xf32>
    %35 = tpu.matmul %33, %34, %cst_10 {dimension_numbers = #tpu.dot_dimension_numbers<[1], [0], [0], [1], [0, 0, 1, 1], [], []>} : vector<32x12xf32>, vector<12x32xf32>, vector<32x32xf32> -> vector<32x32xf32>
    %c0_11 = arith.constant 0 : index
    %c0_12 = arith.constant 0 : index
    %36 = vector.load %arg3[%c0_11, %c0_12] : memref<1x32xf32, #tpu.memory_space<vmem>>, vector<1x32xf32>
    %37 = vector.broadcast %36 : vector<1x32xf32> to vector<32x32xf32>
    %38 = arith.addf %35, %37 : vector<32x32xf32>
    %cst_13 = arith.constant 0.000000e+00 : f32
    %39 = vector.broadcast %cst_13 : f32 to vector<32x32xf32>
    %40 = arith.maximumf %38, %39 : vector<32x32xf32>
    %41 = vector.shape_cast %40 : vector<32x32xf32> to vector<16x2x32xf32>
    %cst_14 = arith.constant dense<0xFF800000> : vector<16x32xf32>
    %42 = vector.multi_reduction <maximumf>, %41, %cst_14 [1] : vector<16x2x32xf32> to vector<16x32xf32>
    %43 = tpu.iota {dimensions = array<i32: 0>} : vector<16x1xi32>
    %c8_i32 = arith.constant 8 : i32
    %c0_i32_15 = arith.constant 0 : i32
    %44 = arith.cmpi eq, %c8_i32, %c0_i32_15 : i32
    %c1_i32_16 = arith.constant 1 : i32
    %45 = arith.select %44, %c1_i32_16, %c8_i32 : i32
    %46 = vector.broadcast %45 : i32 to vector<16x1xi32>
    %47 = arith.remsi %43, %46 : vector<16x1xi32>
    %c0_i32_17 = arith.constant 0 : i32
    %48 = vector.broadcast %c0_i32_17 : i32 to vector<16x1xi32>
    %49 = arith.cmpi ne, %47, %48 : vector<16x1xi32>
    %c0_i32_18 = arith.constant 0 : i32
    %50 = vector.broadcast %c0_i32_18 : i32 to vector<16x1xi32>
    %51 = arith.cmpi slt, %47, %50 : vector<16x1xi32>
    %c0_i32_19 = arith.constant 0 : i32
    %52 = arith.cmpi slt, %45, %c0_i32_19 : i32
    %53 = vector.broadcast %52 : i1 to vector<16x1xi1>
    %54 = vector.broadcast %53 : vector<16x1xi1> to vector<16x1xi1>
    %55 = arith.xori %51, %54 : vector<16x1xi1>
    %56 = arith.andi %55, %49 : vector<16x1xi1>
    %57 = vector.broadcast %45 : i32 to vector<16x1xi32>
    %58 = arith.addi %47, %57 : vector<16x1xi32>
    %59 = arith.select %56, %58, %47 : vector<16x1xi1>, vector<16x1xi32>
    %c1_i32_20 = arith.constant 1 : i32
    %60 = tpu.dynamic_rotate %42 by %c1_i32_20 dim 0 : vector<16x32xf32>, i32 -> vector<16x32xf32>
    %c0_i32_21 = arith.constant 0 : i32
    %61 = vector.broadcast %c0_i32_21 : i32 to vector<16x1xi32>
    %62 = arith.cmpi eq, %59, %61 : vector<16x1xi32>
    %cst_22 = arith.constant 0.000000e+00 : f32
    %63 = vector.shape_cast %62 : vector<16x1xi1> to vector<16x1xi1>
    %64 = vector.broadcast %63 : vector<16x1xi1> to vector<16x32xi1>
    %65 = vector.broadcast %cst_22 : f32 to vector<16x32xf32>
    %66 = arith.select %64, %65, %60 : vector<16x32xi1>, vector<16x32xf32>
    %c15_i32_23 = arith.constant 15 : i32
    %67 = tpu.dynamic_rotate %42 by %c15_i32_23 dim 0 : vector<16x32xf32>, i32 -> vector<16x32xf32>
    %c7_i32 = arith.constant 7 : i32
    %68 = vector.broadcast %c7_i32 : i32 to vector<16x1xi32>
    %69 = arith.cmpi eq, %59, %68 : vector<16x1xi32>
    %cst_24 = arith.constant 0.000000e+00 : f32
    %70 = vector.shape_cast %69 : vector<16x1xi1> to vector<16x1xi1>
    %71 = vector.broadcast %70 : vector<16x1xi1> to vector<16x32xi1>
    %72 = vector.broadcast %cst_24 : f32 to vector<16x32xf32>
    %73 = arith.select %71, %72, %67 : vector<16x32xi1>, vector<16x32xf32>
    %74 = tpu.concatenate %66, %42, %73 in 1 : vector<16x32xf32>, vector<16x32xf32>, vector<16x32xf32> -> vector<16x96xf32>
    %c0_25 = arith.constant 0 : index
    %c0_26 = arith.constant 0 : index
    %75 = vector.load %arg4[%c0_25, %c0_26] : memref<96x32xf32, #tpu.memory_space<vmem>>, vector<96x32xf32>
    %cst_27 = arith.constant dense<0.000000e+00> : vector<16x32xf32>
    %76 = tpu.matmul %74, %75, %cst_27 {dimension_numbers = #tpu.dot_dimension_numbers<[1], [0], [0], [1], [0, 0, 1, 1], [], []>} : vector<16x96xf32>, vector<96x32xf32>, vector<16x32xf32> -> vector<16x32xf32>
    %c0_28 = arith.constant 0 : index
    %c0_29 = arith.constant 0 : index
    %77 = vector.load %arg5[%c0_28, %c0_29] : memref<1x32xf32, #tpu.memory_space<vmem>>, vector<1x32xf32>
    %78 = vector.broadcast %77 : vector<1x32xf32> to vector<16x32xf32>
    %79 = arith.addf %76, %78 : vector<16x32xf32>
    %cst_30 = arith.constant 0.000000e+00 : f32
    %80 = vector.broadcast %cst_30 : f32 to vector<16x32xf32>
    %81 = arith.maximumf %79, %80 : vector<16x32xf32>
    %82 = vector.shape_cast %81 : vector<16x32xf32> to vector<8x2x32xf32>
    %cst_31 = arith.constant dense<0xFF800000> : vector<8x32xf32>
    %83 = vector.multi_reduction <maximumf>, %82, %cst_31 [1] : vector<8x2x32xf32> to vector<8x32xf32>
    %84 = vector.shape_cast %83 : vector<8x32xf32> to vector<2x4x32xf32>
    %85 = vector.extract_strided_slice %84 {offsets = [0, 0, 0], sizes = [2, 1, 32], strides = [1, 1, 1]} : vector<2x4x32xf32> to vector<2x1x32xf32>
    %86 = vector.shape_cast %85 : vector<2x1x32xf32> to vector<2x32xf32>
    %87 = vector.extract_strided_slice %84 {offsets = [0, 1, 0], sizes = [2, 1, 32], strides = [1, 1, 1]} : vector<2x4x32xf32> to vector<2x1x32xf32>
    %88 = vector.shape_cast %87 : vector<2x1x32xf32> to vector<2x32xf32>
    %89 = vector.extract_strided_slice %84 {offsets = [0, 2, 0], sizes = [2, 1, 32], strides = [1, 1, 1]} : vector<2x4x32xf32> to vector<2x1x32xf32>
    %90 = vector.shape_cast %89 : vector<2x1x32xf32> to vector<2x32xf32>
    %91 = vector.extract_strided_slice %84 {offsets = [0, 3, 0], sizes = [2, 1, 32], strides = [1, 1, 1]} : vector<2x4x32xf32> to vector<2x1x32xf32>
    %92 = vector.shape_cast %91 : vector<2x1x32xf32> to vector<2x32xf32>
    %93 = tpu.concatenate %86, %88, %90, %92 in 1 : vector<2x32xf32>, vector<2x32xf32>, vector<2x32xf32>, vector<2x32xf32> -> vector<2x128xf32>
    %c0_32 = arith.constant 0 : index
    %c0_33 = arith.constant 0 : index
    %94 = vector.load %arg6[%c0_32, %c0_33] : memref<128x32xf32, #tpu.memory_space<vmem>>, vector<128x32xf32>
    %cst_34 = arith.constant dense<0.000000e+00> : vector<2x32xf32>
    %95 = tpu.matmul %93, %94, %cst_34 {dimension_numbers = #tpu.dot_dimension_numbers<[1], [0], [0], [1], [0, 0, 1, 1], [], []>} : vector<2x128xf32>, vector<128x32xf32>, vector<2x32xf32> -> vector<2x32xf32>
    %c0_35 = arith.constant 0 : index
    %c0_36 = arith.constant 0 : index
    %96 = vector.load %arg7[%c0_35, %c0_36] : memref<1x32xf32, #tpu.memory_space<vmem>>, vector<1x32xf32>
    %97 = vector.broadcast %96 : vector<1x32xf32> to vector<2x32xf32>
    %98 = arith.addf %95, %97 : vector<2x32xf32>
    %cst_37 = arith.constant 0.000000e+00 : f32
    %99 = vector.broadcast %cst_37 : f32 to vector<2x32xf32>
    %100 = arith.maximumf %98, %99 : vector<2x32xf32>
    %c0_38 = arith.constant 0 : index
    %c0_39 = arith.constant 0 : index
    %101 = vector.load %arg8[%c0_38, %c0_39] : memref<1x32xf32, #tpu.memory_space<vmem>>, vector<1x32xf32>
    %102 = vector.broadcast %101 : vector<1x32xf32> to vector<2x32xf32>
    %103 = arith.mulf %100, %102 : vector<2x32xf32>
    %cst_40 = arith.constant dense<0.000000e+00> : vector<2xf32>
    %104 = vector.multi_reduction <add>, %103, %cst_40 [1] : vector<2x32xf32> to vector<2xf32>
    %105 = vector.shape_cast %104 : vector<2xf32> to vector<2x1xf32>
    %c0_41 = arith.constant 0 : index
    %c0_42 = arith.constant 0 : index
    %106 = vector.load %arg9[%c0_41, %c0_42] : memref<1x1xf32, #tpu.memory_space<vmem>>, vector<1x1xf32>
    %107 = vector.broadcast %106 : vector<1x1xf32> to vector<2x1xf32>
    %108 = arith.addf %105, %107 : vector<2x1xf32>
    %109 = arith.negf %108 : vector<2x1xf32>
    %110 = math.exp %109 : vector<2x1xf32>
    %cst_43 = arith.constant 1.000000e+00 : f32
    %111 = vector.broadcast %cst_43 : f32 to vector<2x1xf32>
    %112 = arith.addf %111, %110 : vector<2x1xf32>
    %113 = arith.divf %111, %112 : vector<2x1xf32>
    %c0_44 = arith.constant 0 : index
    %c0_45 = arith.constant 0 : index
    %114 = vector.load %arg10[%c0_44, %c0_45] : memref<2x1xf32, #tpu.memory_space<vmem>>, vector<2x1xf32>
    tpu.vector_store %arg10[%c0_44, %c0_45], %113 {strides = array<i32>} : memref<2x1xf32, #tpu.memory_space<vmem>>, vector<2x1xf32>,
    return
  }
  func.func @transform_0(%arg0: i32) -> (i32, i32, i32) {
    %c0_i32 = arith.constant 0 : i32
    %c0_i32_0 = arith.constant 0 : i32
    %c0_i32_1 = arith.constant 0 : i32
    return %arg0, %c0_i32, %c0_i32_0 : i32, i32, i32
  }
  func.func @transform_1(%arg0: i32) -> (i32, i32) {
    %c0_i32 = arith.constant 0 : i32
    %c0_i32_0 = arith.constant 0 : i32
    %c0_i32_1 = arith.constant 0 : i32
    return %c0_i32, %c0_i32_0 : i32, i32
  }
  func.func @transform_2(%arg0: i32) -> (i32, i32) {
    %c0_i32 = arith.constant 0 : i32
    %c0_i32_0 = arith.constant 0 : i32
    %c0_i32_1 = arith.constant 0 : i32
    return %c0_i32, %c0_i32_0 : i32, i32
  }
  func.func @transform_3(%arg0: i32) -> (i32, i32) {
    %c0_i32 = arith.constant 0 : i32
    %c0_i32_0 = arith.constant 0 : i32
    %c0_i32_1 = arith.constant 0 : i32
    return %c0_i32, %c0_i32_0 : i32, i32
  }
  func.func @transform_4(%arg0: i32) -> (i32, i32) {
    %c0_i32 = arith.constant 0 : i32
    %c0_i32_0 = arith.constant 0 : i32
    %c0_i32_1 = arith.constant 0 : i32
    return %c0_i32, %c0_i32_0 : i32, i32
  }
  func.func @transform_5(%arg0: i32) -> (i32, i32) {
    %c0_i32 = arith.constant 0 : i32
    %c0_i32_0 = arith.constant 0 : i32
    %c0_i32_1 = arith.constant 0 : i32
    return %c0_i32, %c0_i32_0 : i32, i32
  }
  func.func @transform_6(%arg0: i32) -> (i32, i32) {
    %c0_i32 = arith.constant 0 : i32
    %c0_i32_0 = arith.constant 0 : i32
    %c0_i32_1 = arith.constant 0 : i32
    return %c0_i32, %c0_i32_0 : i32, i32
  }
  func.func @transform_7(%arg0: i32) -> (i32, i32) {
    %c0_i32 = arith.constant 0 : i32
    %c0_i32_0 = arith.constant 0 : i32
    %c0_i32_1 = arith.constant 0 : i32
    return %c0_i32, %c0_i32_0 : i32, i32
  }
  func.func @transform_8(%arg0: i32) -> (i32, i32) {
    %c0_i32 = arith.constant 0 : i32
    %c0_i32_0 = arith.constant 0 : i32
    %c0_i32_1 = arith.constant 0 : i32
    return %c0_i32, %c0_i32_0 : i32, i32
  }
  func.func @transform_9(%arg0: i32) -> (i32, i32) {
    %c0_i32 = arith.constant 0 : i32
    %c0_i32_0 = arith.constant 0 : i32
    return %arg0, %c0_i32 : i32, i32
  }
}

</mosaic_0001>

<bundles_post_ra>
// kernel: cnn_v3_forward.1
= control target key start
LH: loop header
LB: loop body
LE: loop exit
PB: predicated region body
PF: predicated region fallthrough
CT: control target
= control target key end

     0   :  { %v38_v0 = vlaneseq  ;;  %vm205_vm0 = vcmask 1043456   ;;  %s1149_s15 = smov 4   ;;  %vm1150_vm1 = vmmov 1   ;;  %vm173_vm8 = vcmask 31744   ;;  %s1153_s23 = smov 32   ;;  %s1488_s0 = inlined_call_operand.vmem [shape: f32[2,16,4], index: 0, kind: input, shape index: {}]   ;;  %s1489_s1 = inlined_call_operand.vmem [shape: f32[12,32], index: 1, kind: input, shape index: {}]   ;;  %s1490_s3 = inlined_call_operand.vmem [shape: f32[96,32], index: 3, kind: input, shape index: {}]   ;;  %s1491_s2 = inlined_call_operand.vmem [shape: f32[1,32], index: 2, kind: input, shape index: {}]   ;;  %s1492_s5 = inlined_call_operand.vmem [shape: f32[128,32], index: 5, kind: input, shape index: {}]   ;;  %s1493_s4 = inlined_call_operand.vmem [shape: f32[1,32], index: 4, kind: input, shape index: {}]   ;;  %s1494_s8 = inlined_call_operand.<no memory space> [shape: f32[1,1], index: 8, kind: input, shape index: {}]   ;;  %s1495_s6 = inlined_call_operand.vmem [shape: f32[1,32], index: 6, kind: input, shape index: {}]   ;;  %s1496_s7 = inlined_call_operand.vmem [shape: f32[1,32], index: 7, kind: input, shape index: {}]   ;;  %s1497_s9 = inlined_call_operand.vmem [shape: f32[2,1], index: 9, kind: output, shape index: {}]  }
   0x1   :  { %v37_v1 = vld [vmem:[%s1488_s0 + $0x18] sm:$0xff]  ;;  %v34_v2 = vld [vmem:[%s1488_s0] sm:$0xff]  ;;  %v35_v3 = vld [vmem:[%s1488_s0 + $0x8] sm:$0xff]  ;;  %vm178_vm9 = vcmask 64512   ;;  %vm192_vm10 = vcmask 97280   ;;  %vm386_vm12 = vcmask 254976  }
   0x2   :  { %151 = vrot.lane.b32.xlu1 %v37_v1, %s1149_s15  ;;  %145 = vrot.lane.b32.xlu0 %v34_v2, %s1149_s15  ;;  %v116_v4 = vrot.slane %v34_v2, 1  ;;  %v36_v5 = vld [vmem:[%s1488_s0 + $0x10] sm:$0xff]  ;;  %v183_v6 = vld [vmem:[%s1489_s1] sm:$0xff]  ;;  %v94_v7 = vrot.slane %v37_v1, 7  ;;  %v91_v8 = vrot.slane %v34_v2, 7  ;;  %v117_v9 = vrot.slane %v35_v3, 1  ;;  %vm1232_vm2 = vmpackc.low %vm205_vm0, %vm1150_vm1 }
   0x3   :  { %v1226_v10 = vshrl.u32 %v38_v0, 7  ;;  %v184_v11 = vld [vmem:[%s1489_s1 + $0x8] sm:$0xf]  ;;  %v92_v12 = vrot.slane %v35_v3, 7  ;;  %v93_v13 = vrot.slane %v36_v5, 7  ;;  %v118_v14 = vrot.slane %v36_v5, 1 }
   0x4   :  { %v1081_v15 = vpack.c.bf16 %v184_v11, %v183_v6  ;;  %v119_v17 = vrot.slane %v37_v1, 1  ;;  %s1151_s0 = smov 8   ;;  %v606_v53 = vld [vmem:[%s1490_s3] sm:$0xff]  ;;  %v607_v54 = vld [vmem:[%s1490_s3 + $0x8] sm:$0xff]  ;;  %v608_v55 = vld [vmem:[%s1490_s3 + $0x10] sm:$0xff]  ;;  %vm539_vm13 = vcmask 1041409  }
   0x5   :  { %vm120_vm3 = vcmp.lt.s32.totalorder %v1226_v10, 7  ;;  %v1238_v18 = vadd.s32 8, %v1226_v10  ;;  %v42_v19 = vadd.s32 24, %v1226_v10  ;;  %vm95_vm4 = vcmp.lt.s32.totalorder %v1226_v10, 1  ;;  %v609_v57 = vld [vmem:[%s1490_s3 + $0x18] sm:$0xff]  ;;  %v610_v59 = vld [vmem:[%s1490_s3 + $0x20] sm:$0xff] }
   0x6   :  { %147 = vrot.lane.b32.xlu0 %v35_v3, %s1149_s15  ;;  %v123_v20 = vsel %vm120_vm3, %v116_v4, %v117_v9  ;;  %v122_v22 = vsel %vm120_vm3, %v117_v9, %v118_v14  ;;  %1083 = vmatprep.subr.msk.bf16.mxu1 %vm1232_vm2, %v1081_v15  ;;  %v96_v24 = vsel %vm95_vm4, %v93_v13, %v94_v7  ;;  %v47_v32 = vand.u32 15, %v1226_v10  ;;  %v611_v60 = vld [vmem:[%s1490_s3 + $0x28] sm:$0xff]  ;;  %v612_v62 = vld [vmem:[%s1490_s3 + $0x30] sm:$0xff]  ;;  %v613_v63 = vld [vmem:[%s1490_s3 + $0x38] sm:$0xff] }
   0x7   :  { %161 = vrot.lane.b32.xlu1 %v123_v20, %s1151_s0  ;;  %v54_v21 = vand.u32 15, %v1238_v18  ;;  %v68_v23 = vand.u32 15, %v42_v19  ;;  %v99_v25 = vsel %vm95_vm4, %v94_v7, %v91_v8  ;;  %v98_v26 = vsel %vm95_vm4, %v91_v8, %v92_v12  ;;  %1086 = vmatpush3.bf16.msk.msra.mxu1 %vm1232_vm2, %v1081_v15 }
   0x8   :  { %v124_v27 = vsel %vm120_vm3, %v119_v17, %v116_v4  ;;  %v97_v28 = vsel %vm95_vm4, %v92_v12, %v93_v13  ;;  %v121_v30 = vsel %vm120_vm3, %v118_v14, %v119_v17  ;;  %v41_v33 = vadd.s32 16, %v1226_v10  ;;  %v959_v4 = vld [vmem:[%s1491_s2] ss:$0 sm:$0xff] }
   0x9   :  { %vm126_vm5 = vcmp.eq.s32.totalorder %v54_v21, 15  ;;  %vm128_vm6 = vcmp.eq.s32.totalorder %v68_v23, 15  ;;  %vm100_vm7 = vcmp.eq.s32.totalorder %v47_v32, 0  ;;  %v1087_v56 = vpack.c.bf16 %v607_v54, %v606_v53 }
   0xa   :  { %149 = vrot.lane.b32.xlu0 %v36_v5, %s1149_s15  ;;  %v138_v29 = vsel %vm126_vm5, 0.0, %v122_v22  ;;  %v140_v31 = vsel %vm128_vm6, 0.0, %v124_v27  ;;  %v112_v36 = vsel %vm100_vm7, 0.0, %v99_v25  ;;  %v61_v37 = vand.u32 15, %v41_v33 }
   0xb   :  { %163 = vrot.lane.b32.xlu1 %v138_v29, %s1151_s0  ;;  %v1091_v58 = vpack.c.bf16 %v609_v57, %v608_v55  ;;  %1088 = vmatprep.subr.bf16.mxu1 %v1087_v56  ;;  %v1095_v61 = vpack.c.bf16 %v611_v60, %v610_v59  ;;  %v1099_v0 = vpack.c.bf16 %v613_v63, %v612_v62  ;;  %v1152_v1 = vmov 1983009808  }
   0xc   :  { %vm102_vm11 = vcmp.eq.s32.totalorder %v61_v37, 0  ;;  %v304_v2 = vunpack.c.l.s4 %v1152_v1  ;;  %vm541_vm14 = vcmask 1042434   ;;  %vm543_vm15 = vcmask 1043459  }
   0xd   :  { %v114_v44 = vsel %vm102_vm11, 0.0, %v97_v28  ;;  %vm545_vm0 = vcmask 1044484   ;;  %vm547_vm1 = vcmask 1045509   ;;  %vm549_vm2 = vcmask 1046534  }
   0xe   :  { %165 = vrot.lane.b32.xlu0 %v121_v30, %s1151_s0  ;;  %v305_v3 = vunpack.c.0.s8 %v304_v2  ;;  %vm551_vm5 = vcmask 1047559   ;;  %vm1156_vm11 = vmmov 0  }
   0xf   :  { %167 = vrot.lane.b32.xlu1 %v140_v31, %s1151_s0 }
  0x10   :  { %v1307_v6 = vsub.s32 %v305_v3, %v1226_v10 }
  0x74   :  { %v152_v34 = vpop.permute.xlu1 %151  ;;  %v146_v35 = vpop.permute.xlu0 %145 }
  0x75   :  { %v174_v39 = vsel %vm173_vm8, %v112_v36, %v146_v35  ;;  %v177_v49 = vsel %vm173_vm8, %v96_v24, %v152_v34 }
  0x78   :  { %v148_v38 = vpop.permute.xlu0 %147 }
  0x79   :  { %v162_v40 = vpop.permute.xlu1 %161  ;;  %v175_v43 = vsel %vm173_vm8, %v98_v26, %v148_v38 }
  0x7a   :  { %v179_v41 = vsel %vm178_vm9, %v174_v39, %v162_v40 }
  0x7b   :  { %1013 = vmatprep.mubr.msk.f32.mxu1 %vm192_vm10, %v179_v41 }
  0x7c   :  { %v150_v42 = vpop.permute.xlu0 %149 }
  0x7d   :  { %v164_v45 = vpop.permute.xlu1 %163  ;;  %v176_v47 = vsel %vm173_vm8, %v114_v44, %v150_v42 }
  0x7e   :  { %v180_v46 = vsel %vm178_vm9, %v175_v43, %v164_v45 }
  0x7f   :  { %1014 = vmatmul.mubr.msk.f32.vlgmr.msra.gmra.mrb[0].mxu1 %vm192_vm10, %v180_v46 }
  0x80   :  { %v166_v48 = vpop.permute.xlu0 %165  ;;  %1090 = vmatpush3.bf16.msra.mxu1 %v1087_v56 }
  0x81   :  { %v181_v50 = vsel %vm178_vm9, %v176_v47, %v166_v48  ;;  %v168_v51 = vpop.permute.xlu1 %167  ;;  %1092 = vmatprep.subr.bf16.mxu1 %v1091_v58 }
  0x82   :  { %v182_v52 = vsel %vm178_vm9, %v177_v49, %v168_v51  ;;  %1016 = vmatprep.mubr.msk.f32.mxu1 %vm192_vm10, %v181_v50 }
  0x83   :  { %1017 = vmatmul.mubr.msk.f32.gmra.mrb[2].mxu1 %vm192_vm10, %v182_v52  ;;  %vm625_vm10 = vcmask 785408  }
  0x84   :  { %1094 = vmatpush3.bf16.msra.mxu1 %v1091_v58 }
  0x85   :  { %1096 = vmatprep.subr.bf16.mxu1 %v1095_v61 }
  0x88   :  { %1098 = vmatpush3.bf16.msra.mxu1 %v1095_v61 }
  0x89   :  { %1100 = vmatprep.subr.bf16.mxu1 %v1099_v0 }
  0x8c   :  { %1102 = vmatpush3.bf16.msra.mxu1 %v1099_v0 }
 0x152   :  { %v1015_v5 = vpop.f32.mrb[0].mxu1 }
 0x153   :  { %v281_v7 = vadd.f32 %v1015_v5, %v959_v4  ;;  %v275_v8 = vpop.f32.mrb[1].mxu1 }
 0x154   :  { %v276_v9 = vadd.f32 %v959_v4, %v275_v8 }
 0x155   :  { %v295_v11 = vmax.f32 %v281_v7, 0.0 }
 0x156   :  { %v294_v12 = vmax.f32 %v276_v9, 0.0  ;;  %v1018_v13 = vpop.f32.mrb[2].mxu1 }
 0x157   :  { %v319_v14 = vcombine.high %v295_v11, %v295_v11  ;;  %v326_v15 = vrot.slane %v295_v11, %v1307_v6  ;;  %v285_v16 = vpop.f32.mrb[3].mxu1  ;;  %v291_v23 = vadd.f32 %v1018_v13, %v959_v4 }
 0x158   :  { %v302_v17 = vcombine.high %v294_v12, %v294_v12  ;;  %v309_v19 = vrot.slane %v294_v12, %v1307_v6  ;;  %v286_v54 = vadd.f32 %v959_v4, %v285_v16 }
 0x159   :  { %v333_v20 = vrot.slane %v319_v14, %v1307_v6  ;;  %v334_v21 = vcombine.high %v326_v15, %v326_v15  ;;  %v415_v22 = vsel %vm386_vm12, %v326_v15, -inf  ;;  %v297_v41 = vmax.f32 %v291_v23, 0.0 }
 0x15a   :  { %v416_v24 = vrot.slane %v415_v22, 4  ;;  %v316_v25 = vrot.slane %v302_v17, %v1307_v6  ;;  %v317_v26 = vcombine.high %v309_v19, %v309_v19  ;;  %v387_v27 = vsel %vm386_vm12, %v309_v19, -inf }
 0x15b   :  { %v335_v28 = vcombine.high %v333_v20, %v333_v20  ;;  %v422_v29 = vsel %vm386_vm12, %v334_v21, -inf  ;;  %v429_v30 = vsel %vm386_vm12, %v333_v20, -inf  ;;  %v388_v31 = vrot.slane %v387_v27, 4 }
 0x15c   :  { %v417_v32 = vmax.f32 %v415_v22, %v416_v24  ;;  %v423_v33 = vrot.slane %v422_v29, 4  ;;  %v430_v34 = vrot.slane %v429_v30, 4  ;;  %v318_v35 = vcombine.high %v316_v25, %v316_v25 }
 0x15d   :  { %v389_v36 = vmax.f32 %v387_v27, %v388_v31  ;;  %v394_v37 = vsel %vm386_vm12, %v317_v26, -inf  ;;  %v401_v38 = vsel %vm386_vm12, %v316_v25, -inf  ;;  %v436_v40 = vsel %vm386_vm12, %v335_v28, -inf }
 0x15e   :  { %v418_v39 = vrot.slane %v417_v32, 2  ;;  %v424_v42 = vmax.f32 %v422_v29, %v423_v33  ;;  %v395_v43 = vrot.slane %v394_v37, 4  ;;  %v402_v44 = vrot.slane %v401_v38, 4 }
 0x15f   :  { %v408_v45 = vsel %vm386_vm12, %v318_v35, -inf  ;;  %v431_v46 = vmax.f32 %v429_v30, %v430_v34  ;;  %v390_v47 = vrot.slane %v389_v36, 2  ;;  %v437_v52 = vrot.slane %v436_v40, 4 }
 0x160   :  { %v419_v48 = vmax.f32 %v417_v32, %v418_v39  ;;  %v396_v49 = vmax.f32 %v394_v37, %v395_v43  ;;  %v403_v50 = vmax.f32 %v401_v38, %v402_v44  ;;  %v409_v51 = vrot.slane %v408_v45, 4 }
 0x161   :  { %v353_v53 = vcombine.high %v297_v41, %v297_v41  ;;  %v425_v55 = vrot.slane %v424_v42, 2  ;;  %v432_v59 = vrot.slane %v431_v46, 2  ;;  %v391_v60 = vmax.f32 %v389_v36, %v390_v47 }
 0x162   :  { %v397_v56 = vrot.slane %v396_v49, 2  ;;  %v404_v57 = vrot.slane %v403_v50, 2  ;;  %v410_v58 = vmax.f32 %v408_v45, %v409_v51  ;;  %v360_v61 = vrot.slane %v297_v41, %v1307_v6 }
 0x163   :  { %v367_v62 = vrot.slane %v353_v53, %v1307_v6  ;;  %v420_v63 = vrot.slane %v419_v48, 1  ;;  %v426_v8 = vmax.f32 %v424_v42, %v425_v55  ;;  %v392_v13 = vrot.slane %v391_v60, 1 }
 0x164   :  { %v398_v0 = vmax.f32 %v396_v49, %v397_v56  ;;  %v405_v1 = vmax.f32 %v403_v50, %v404_v57  ;;  %v411_v2 = vrot.slane %v410_v58, 2  ;;  %v368_v3 = vcombine.high %v360_v61, %v360_v61 }
 0x165   :  { %v369_v5 = vcombine.high %v367_v62, %v367_v62  ;;  %v471_v7 = vsel %vm386_vm12, %v360_v61, -inf  ;;  %v485_v4 = vsel %vm386_vm12, %v367_v62, -inf  ;;  %v296_v16 = vmax.f32 %v286_v54, 0.0 }
 0x166   :  { %v399_v9 = vrot.slane %v398_v0, 1  ;;  %v412_v11 = vmax.f32 %v410_v58, %v411_v2  ;;  %v472_v12 = vrot.slane %v471_v7, 4  ;;  %v478_v14 = vsel %vm386_vm12, %v368_v3, -inf }
 0x167   :  { %v486_v15 = vrot.slane %v485_v4, 4  ;;  %v438_v17 = vmax.f32 %v436_v40, %v437_v52  ;;  %v406_v19 = vrot.slane %v405_v1, 1  ;;  %v492_v21 = vsel %vm386_vm12, %v369_v5, -inf }
 0x168   :  { %v473_v20 = vmax.f32 %v471_v7, %v472_v12  ;;  %v433_v22 = vmax.f32 %v431_v46, %v432_v59  ;;  %v400_v23 = vmax.f32 %v398_v0, %v399_v9  ;;  %v413_v24 = vrot.slane %v412_v11, 1  ;;  %v614_v12 = vld [vmem:[%s1490_s3 + $0x40] sm:$0xff] }
 0x169   :  { %v336_v25 = vcombine.high %v296_v16, %v296_v16  ;;  %v421_v26 = vmax.f32 %v419_v48, %v420_v63  ;;  %v479_v27 = vrot.slane %v478_v14, 4  ;;  %v487_v28 = vmax.f32 %v485_v4, %v486_v15 }
 0x16a   :  { %v343_v29 = vrot.slane %v296_v16, %v1307_v6  ;;  %v427_v30 = vrot.slane %v426_v8, 1  ;;  %v393_v31 = vmax.f32 %v391_v60, %v392_v13  ;;  %v493_v32 = vrot.slane %v492_v21, 4  ;;  %v615_v13 = vld [vmem:[%s1490_s3 + $0x48] sm:$0xff] }
 0x16b   :  { %v350_v33 = vrot.slane %v336_v25, %v1307_v6  ;;  %v407_v34 = vmax.f32 %v405_v1, %v406_v19  ;;  %v474_v35 = vrot.slane %v473_v20, 2  ;;  %v414_v38 = vmax.f32 %v412_v11, %v413_v24  ;;  %v616_v19 = vld [vmem:[%s1490_s3 + $0x50] sm:$0xff] }
 0x16c   :  { %v351_v36 = vcombine.high %v343_v29, %v343_v29  ;;  %v443_v37 = vsel %vm386_vm12, %v343_v29, -inf  ;;  %v540_v39 = vsel %vm539_vm13, %v400_v23, %v393_v31  ;;  %v480_v42 = vmax.f32 %v478_v14, %v479_v27 }
 0x16d   :  { %v352_v40 = vcombine.high %v350_v33, %v350_v33  ;;  %v444_v41 = vrot.slane %v443_v37, 4  ;;  %v488_v43 = vrot.slane %v487_v28, 2  ;;  %v457_v45 = vsel %vm386_vm12, %v350_v33, -inf }
 0x16e   :  { %v450_v44 = vsel %vm386_vm12, %v351_v36, -inf  ;;  %v494_v46 = vmax.f32 %v492_v21, %v493_v32  ;;  %v458_v49 = vrot.slane %v457_v45, 4  ;;  %v475_v50 = vmax.f32 %v473_v20, %v474_v35  ;;  %v617_v20 = vld [vmem:[%s1490_s3 + $0x58] sm:$0xff]  ;;  %s1154_s3 = smov 64  }
 0x16f   :  { %v445_v47 = vmax.f32 %v443_v37, %v444_v41  ;;  %v451_v48 = vrot.slane %v450_v44, 4  ;;  %v464_v51 = vsel %vm386_vm12, %v352_v40, -inf  ;;  %v434_v52 = vrot.slane %v433_v22, 1 }
 0x170   :  { %v439_v53 = vrot.slane %v438_v17, 2  ;;  %v459_v56 = vmax.f32 %v457_v45, %v458_v49  ;;  %v428_v57 = vmax.f32 %v426_v8, %v427_v30  ;;  %v481_v58 = vrot.slane %v480_v42, 2 }
 0x171   :  { %v446_v54 = vrot.slane %v445_v47, 2  ;;  %v452_v55 = vmax.f32 %v450_v44, %v451_v48  ;;  %v465_v59 = vrot.slane %v464_v51, 4  ;;  %v542_v61 = vsel %vm541_vm14, %v407_v34, %v540_v39 }
 0x172   :  { %v440_v60 = vmax.f32 %v438_v17, %v439_v53  ;;  %v460_v0 = vrot.slane %v459_v56, 2  ;;  %v544_v1 = vsel %vm543_vm15, %v414_v38, %v542_v61  ;;  %v435_v3 = vmax.f32 %v433_v22, %v434_v52 }
 0x173   :  { %v447_v62 = vmax.f32 %v445_v47, %v446_v54  ;;  %v453_v63 = vrot.slane %v452_v55, 2  ;;  %v466_v2 = vmax.f32 %v464_v51, %v465_v59  ;;  %v546_v7 = vsel %vm545_vm0, %v421_v26, %v544_v1 }
 0x174   :  { %v441_v5 = vrot.slane %v440_v60, 1  ;;  %v461_v11 = vmax.f32 %v459_v56, %v460_v0  ;;  %v548_v8 = vsel %vm547_vm1, %v428_v57, %v546_v7  ;;  %v482_v14 = vmax.f32 %v480_v42, %v481_v58 }
 0x175   :  { %v448_v4 = vrot.slane %v447_v62, 1  ;;  %v454_v9 = vmax.f32 %v452_v55, %v453_v63  ;;  %v467_v15 = vrot.slane %v466_v2, 2  ;;  %v550_v17 = vsel %vm549_vm2, %v435_v3, %v548_v8 }
 0x176   :  { %v442_v16 = vmax.f32 %v440_v60, %v441_v5  ;;  %v489_v21 = vmax.f32 %v487_v28, %v488_v43  ;;  %v462_v23 = vrot.slane %v461_v11, 1  ;;  %v495_v24 = vrot.slane %v494_v46, 2 }
 0x177   :  { %v455_v22 = vrot.slane %v454_v9, 1  ;;  %v468_v25 = vmax.f32 %v466_v2, %v467_v15  ;;  %v1103_v27 = vpack.c.bf16 %v615_v13, %v614_v12  ;;  %v1107_v29 = vpack.c.bf16 %v617_v20, %v616_v19  ;;  %v834_v13 = vld [vmem:[%s1492_s5] sm:$0xff]  ;;  %v836_v15 = vld [vmem:[%s1492_s5 + $0x10] sm:$0xff] }
 0x178   :  { %v552_v26 = vsel %vm551_vm5, %v442_v16, %v550_v17  ;;  %v476_v30 = vrot.slane %v475_v50, 1  ;;  %v449_v31 = vmax.f32 %v447_v62, %v448_v4  ;;  %v463_v33 = vmax.f32 %v461_v11, %v462_v23  ;;  %v837_v17 = vld [vmem:[%s1492_s5 + $0x18] sm:$0xff]  ;;  %v838_v20 = vld [vmem:[%s1492_s5 + $0x20] sm:$0xff]  ;;  %v840_v23 = vld [vmem:[%s1492_s5 + $0x30] sm:$0xff] }
 0x179   :  { %v456_v32 = vmax.f32 %v454_v9, %v455_v22  ;;  %586 = vrot.lane.b32.xlu0 %v552_v26, %s1153_s23  ;;  %v483_v34 = vrot.slane %v482_v14, 1  ;;  %v469_v35 = vrot.slane %v468_v25, 1  ;;  %v496_v36 = vmax.f32 %v494_v46, %v495_v24  ;;  %1104 = vmatprep.subr.bf16.mxu1 %v1103_v27  ;;  %v841_v24 = vld [vmem:[%s1492_s5 + $0x38] sm:$0xff] }
 0x17a   :  { %v490_v37 = vrot.slane %v489_v21, 1  ;;  %1106 = vmatpush3.bf16.msra.mxu1 %v1103_v27  ;;  %v477_v41 = vmax.f32 %v475_v50, %v476_v30  ;;  %v510_v42 = vand.u32 7, %v1238_v18  ;;  %v503_v45 = vand.u32 7, %v1226_v10  ;;  %v843_v27 = vld [vmem:[%s1492_s5 + $0x48] sm:$0xff]  ;;  %v844_v30 = vld [vmem:[%s1492_s5 + $0x50] sm:$0xff] }
 0x17b   :  { %v553_v28 = vsel %vm539_vm13, %v456_v32, %v449_v31  ;;  %v470_v38 = vmax.f32 %v468_v25, %v469_v35  ;;  %v497_v39 = vrot.slane %v496_v36, 1  ;;  %1108 = vmatprep.subr.bf16.mxu1 %v1107_v29  ;;  %v484_v43 = vmax.f32 %v482_v14, %v483_v34  ;;  %v835_v14 = vld [vmem:[%s1492_s5 + $0x8] sm:$0xff]  ;;  %v845_v31 = vld [vmem:[%s1492_s5 + $0x58] sm:$0xff] }
 0x17c   :  { %v554_v40 = vsel %vm541_vm14, %v463_v33, %v553_v28  ;;  %v491_v47 = vmax.f32 %v489_v21, %v490_v37  ;;  %vm1361_vm6 = vcmp.eq.s32.totalorder %v510_v42, 7  ;;  %vm1366_vm7 = vcmp.eq.s32.totalorder %v503_v45, 7  ;;  %v839_v21 = vld [vmem:[%s1492_s5 + $0x28] sm:$0xff]  ;;  %v846_v33 = vld [vmem:[%s1492_s5 + $0x60] sm:$0xff] }
 0x17d   :  { %v555_v44 = vsel %vm543_vm15, %v470_v38, %v554_v40  ;;  %v498_v48 = vmax.f32 %v496_v36, %v497_v39  ;;  %vm1370_vm8 = vcmp.eq.s32.totalorder %v503_v45, 0  ;;  %vm1374_vm9 = vcmp.eq.s32.totalorder %v510_v42, 0  ;;  %v847_v34 = vld [vmem:[%s1492_s5 + $0x68] sm:$0xff]  ;;  %v965_v36 = vld [vmem:[%s1493_s4] ss:$0 sm:$0xff] }
 0x17e   :  { %v556_v46 = vsel %vm545_vm0, %v477_v41, %v555_v44  ;;  %1110 = vmatpush3.bf16.msra.mxu1 %v1107_v29  ;;  %v562_v55 = vrot.slane %v552_v26, 7  ;;  %v574_v56 = vrot.slane %v552_v26, 1  ;;  %v1155_v12 = vmov 0.0|0.0   ;;  %v842_v26 = vld [vmem:[%s1492_s5 + $0x40] sm:$0xff] }
 0x17f   :  { %v557_v49 = vsel %vm547_vm1, %v484_v43, %v556_v46  ;;  %1111 = vmatprep.subr.bf16.mxu0 %v1155_v12  ;;  %v1112_v16 = vpack.c.bf16 %v835_v14, %v834_v13  ;;  %v1115_v19 = vpack.c.bf16 %v837_v17, %v836_v15  ;;  %v1118_v22 = vpack.c.bf16 %v839_v21, %v838_v20 }
 0x180   :  { %v558_v51 = vsel %vm549_vm2, %v491_v47, %v557_v49  ;;  %v1121_v25 = vpack.c.bf16 %v841_v24, %v840_v23  ;;  %v1124_v29 = vpack.c.bf16 %v843_v27, %v842_v26  ;;  %v1127_v32 = vpack.c.bf16 %v845_v31, %v844_v30  ;;  %v849_v26 = vld [vmem:[%s1492_s5 + $0x78] sm:$0xff] }
 0x181   :  { %v559_v18 = vsel %vm551_vm5, %v498_v48, %v558_v51  ;;  %1113 = vmatpush3.bf16.msra.mxu0 %v1112_v16  ;;  %v1130_v35 = vpack.c.bf16 %v847_v34, %v846_v33 }
 0x182   :  { %588 = vrot.lane.b32.xlu1 %v559_v18, %s1153_s23  ;;  %v563_v57 = vrot.slane %v559_v18, 7  ;;  %v575_v58 = vrot.slane %v559_v18, 1  ;;  %1114 = vmatprep.subr.bf16.mxu0 %v1155_v12 }
 0x184   :  { %v577_v59 = vsel %vm120_vm3, %v575_v58, %v574_v56  ;;  %v576_v60 = vsel %vm120_vm3, %v574_v56, %v575_v58  ;;  %v565_v61 = vsel %vm95_vm4, %v563_v57, %v562_v55  ;;  %v564_v62 = vsel %vm95_vm4, %v562_v55, %v563_v57 }
 0x185   :  { %v585_v63 = vsel %vm1361_vm6, 0.0, %v577_v59  ;;  %v584_v0 = vsel %vm1366_vm7, 0.0, %v576_v60  ;;  %v572_v1 = vsel %vm1370_vm8, 0.0, %v565_v61  ;;  %v573_v2 = vsel %vm1374_vm9, 0.0, %v564_v62  ;;  %1116 = vmatpush3.bf16.msra.mxu0 %v1115_v19 }
 0x186   :  { %596 = vrot.lane.b32.xlu1 %v585_v63, %s1154_s3  ;;  %594 = vrot.lane.b32.xlu0 %v584_v0, %s1154_s3  ;;  %vm600_vm3 = vcmask 261120   ;;  %vm603_vm4 = vcmask 523264  }
 0x187   :  { %1117 = vmatprep.subr.bf16.mxu0 %v1155_v12 }
 0x189   :  { %1119 = vmatpush3.bf16.msra.mxu0 %v1118_v22 }
 0x18a   :  { %1120 = vmatprep.subr.bf16.mxu0 %v1155_v12 }
 0x18d   :  { %1122 = vmatpush3.bf16.msra.mxu0 %v1121_v25  ;;  %v848_v25 = vld [vmem:[%s1492_s5 + $0x70] sm:$0xff]  ;;  %s1158_s5 = smov 96  }
 0x18e   :  { %1123 = vmatprep.subr.bf16.mxu0 %v1155_v12 }
 0x191   :  { %1125 = vmatpush3.bf16.msra.mxu0 %v1124_v29 }
 0x192   :  { %1126 = vmatprep.subr.bf16.mxu0 %v1155_v12 }
 0x195   :  { %1128 = vmatpush3.bf16.msra.mxu0 %v1127_v32 }
 0x196   :  { %1129 = vmatprep.subr.bf16.mxu0 %v1155_v12 }
 0x199   :  { %1131 = vmatpush3.bf16.msra.mxu0 %v1130_v35 }
 0x19a   :  { %1132 = vmatprep.subr.bf16.mxu0 %v1155_v12 }
 0x1eb   :  { %v587_v3 = vpop.permute.xlu0 %586 }
 0x1ec   :  { %v601_v5 = vsel %vm600_vm3, %v572_v1, %v587_v3 }
 0x1f4   :  { %v589_v10 = vpop.permute.xlu1 %588 }
 0x1f5   :  { %v602_v7 = vsel %vm600_vm3, %v573_v2, %v589_v10 }
 0x1f8   :  { %v597_v4 = vpop.permute.xlu1 %596  ;;  %v595_v9 = vpop.permute.xlu0 %594 }
 0x1f9   :  { %v605_v11 = vsel %vm603_vm4, %v602_v7, %v597_v4  ;;  %v604_v8 = vsel %vm603_vm4, %v601_v5, %v595_v9 }
 0x1fa   :  { %1043 = vmatprep.mubr.msk.f32.mxu1 %vm625_vm10, %v604_v8 }
 0x1fb   :  { %1044 = vmatmul.mubr.msk.f32.vlgmr.msra.gmra.mrb[4].mxu1 %vm625_vm10, %v605_v11 }
 0x2ce   :  { %v1045_v28 = vpop.f32.mrb[4].mxu1 }
 0x2cf   :  { %v704_v37 = vadd.f32 %v1045_v28, %v965_v36  ;;  %v698_v38 = vpop.f32.mrb[5].mxu1 }
 0x2d0   :  { %v699_v39 = vadd.f32 %v965_v36, %v698_v38  ;;  %v1133_v38 = vpack.c.bf16 %v849_v26, %v848_v25 }
 0x2d1   :  { %v708_v40 = vmax.f32 %v704_v37, 0.0 }
 0x2d2   :  { %v707_v41 = vmax.f32 %v699_v39, 0.0  ;;  %1134 = vmatpush3.bf16.msra.mxu0 %v1133_v38 }
 0x2d3   :  { %v728_v42 = vcombine.high %v708_v40, %v708_v40  ;;  %v735_v43 = vrot.slane %v708_v40, %v1307_v6 }
 0x2d4   :  { %v711_v44 = vcombine.high %v707_v41, %v707_v41  ;;  %v718_v45 = vrot.slane %v707_v41, %v1307_v6 }
 0x2d5   :  { %v742_v47 = vrot.slane %v728_v42, %v1307_v6  ;;  %v743_v46 = vcombine.high %v735_v43, %v735_v43  ;;  %v781_v48 = vsel %vm386_vm12, %v735_v43, -inf }
 0x2d6   :  { %v782_v49 = vrot.slane %v781_v48, 4  ;;  %v725_v51 = vrot.slane %v711_v44, %v1307_v6  ;;  %v726_v52 = vcombine.high %v718_v45, %v718_v45  ;;  %v753_v18 = vsel %vm386_vm12, %v718_v45, -inf }
 0x2d7   :  { %v744_v50 = vcombine.high %v742_v47, %v742_v47  ;;  %v788_v53 = vsel %vm386_vm12, %v743_v46, -inf  ;;  %v795_v54 = vsel %vm386_vm12, %v742_v47, -inf  ;;  %v754_v55 = vrot.slane %v753_v18, 4 }
 0x2d8   :  { %v783_v56 = vmax.f32 %v781_v48, %v782_v49  ;;  %v789_v57 = vrot.slane %v788_v53, 4  ;;  %v796_v58 = vrot.slane %v795_v54, 4  ;;  %v727_v59 = vcombine.high %v725_v51, %v725_v51 }
 0x2d9   :  { %v802_v60 = vsel %vm386_vm12, %v744_v50, -inf  ;;  %v755_v61 = vmax.f32 %v753_v18, %v754_v55  ;;  %v760_v62 = vsel %vm386_vm12, %v726_v52, -inf  ;;  %v767_v6 = vsel %vm386_vm12, %v725_v51, -inf }
 0x2da   :  { %v784_v63 = vrot.slane %v783_v56, 2  ;;  %v790_v0 = vmax.f32 %v788_v53, %v789_v57  ;;  %v797_v1 = vmax.f32 %v795_v54, %v796_v58  ;;  %v803_v2 = vrot.slane %v802_v60, 4  ;;  %v968_v58 = vld [vmem:[%s1495_s6] ss:$0 sm:$0xff] }
 0x2db   :  { %v756_v3 = vrot.slane %v755_v61, 2  ;;  %v761_v10 = vrot.slane %v760_v62, 4  ;;  %v768_v5 = vrot.slane %v767_v6, 4  ;;  %v774_v7 = vsel %vm386_vm12, %v727_v59, -inf }
 0x2dc   :  { %v785_v4 = vmax.f32 %v783_v56, %v784_v63  ;;  %v791_v9 = vrot.slane %v790_v0, 2  ;;  %v798_v11 = vrot.slane %v797_v1, 2  ;;  %v804_v8 = vmax.f32 %v802_v60, %v803_v2 }
 0x2dd   :  { %v757_v12 = vmax.f32 %v755_v61, %v756_v3  ;;  %v762_v13 = vmax.f32 %v760_v62, %v761_v10  ;;  %v769_v14 = vmax.f32 %v767_v6, %v768_v5  ;;  %v775_v15 = vrot.slane %v774_v7, 4  ;;  %v969_v62 = vld [vmem:[%s1496_s7] ss:$0 sm:$0xff] }
 0x2de   :  { %v786_v16 = vrot.slane %v785_v4, 1  ;;  %v792_v17 = vmax.f32 %v790_v0, %v791_v9  ;;  %v799_v19 = vmax.f32 %v797_v1, %v798_v11  ;;  %v805_v20 = vrot.slane %v804_v8, 2 }
 0x2df   :  { %v758_v21 = vrot.slane %v757_v12, 1  ;;  %v763_v22 = vrot.slane %v762_v13, 2  ;;  %v770_v23 = vrot.slane %v769_v14, 2  ;;  %v776_v24 = vmax.f32 %v774_v7, %v775_v15 }
 0x2e0   :  { %v793_v27 = vrot.slane %v792_v17, 1  ;;  %v800_v29 = vrot.slane %v799_v19, 1  ;;  %v806_v30 = vmax.f32 %v804_v8, %v805_v20  ;;  %v787_v31 = vmax.f32 %v785_v4, %v786_v16 }
 0x2e1   :  { %v764_v32 = vmax.f32 %v762_v13, %v763_v22  ;;  %v771_v33 = vmax.f32 %v769_v14, %v770_v23  ;;  %v777_v34 = vrot.slane %v776_v24, 2  ;;  %v759_v35 = vmax.f32 %v757_v12, %v758_v21 }
 0x2e2   :  { %v794_v36 = vmax.f32 %v792_v17, %v793_v27  ;;  %v801_v28 = vmax.f32 %v799_v19, %v800_v29  ;;  %v807_v37 = vrot.slane %v806_v30, 1  ;;  %v1157_v46 = vmov 0.0  }
 0x2e3   :  { %v765_v39 = vrot.slane %v764_v32, 1  ;;  %v772_v40 = vrot.slane %v771_v33, 1  ;;  %v778_v41 = vmax.f32 %v776_v24, %v777_v34  ;;  %v811_v42 = vsel %vm539_vm13, %v787_v31, %v759_v35  ;;  %1078 = vmatprep.mubr.msk.f32.mxu0 %vm1156_vm11, %v1157_v46 }
 0x2e4   :  { %v808_v47 = vmax.f32 %v806_v30, %v807_v37  ;;  %v14_v57 = vstv %s1494_s8 }
 0x2e5   :  { %v766_v43 = vmax.f32 %v764_v32, %v765_v39  ;;  %v773_v44 = vmax.f32 %v771_v33, %v772_v40  ;;  %v779_v45 = vrot.slane %v778_v41, 1  ;;  %15 = vst [vmem:[#allocation2] sm:$0x1] %v14_v57 }
 0x2e7   :  { %v815_v48 = vsel %vm539_vm13, %v794_v36, %v766_v43  ;;  %v821_v49 = vsel %vm539_vm13, %v801_v28, %v773_v44  ;;  %v780_v51 = vmax.f32 %v778_v41, %v779_v45 }
 0x2e8   :  { %816 = vrot.lane.b32.xlu0 %v815_v48, %s1153_s23  ;;  %822 = vrot.lane.b32.xlu1 %v821_v49, %s1154_s3 }
 0x2e9   :  { %v827_v52 = vsel %vm539_vm13, %v808_v47, %v780_v51  ;;  %vm953_vm13 = vcmask 1024  }
 0x2ec   :  { %828 = vrot.lane.b32.xlu0 %v827_v52, %s1158_s5  ;;  %v970_v1 = vld [vmem:[#allocation2] ss:$0 sm:$0xff] }
 0x35a   :  { %v817_v18 = vpop.permute.xlu0 %816  ;;  %v823_v53 = vpop.permute.xlu1 %822 }
 0x35b   :  { %v831_v50 = vsel %vm600_vm3, %v811_v42, %v817_v18 }
 0x35c   :  { %v832_v54 = vsel %vm603_vm4, %v831_v50, %v823_v53 }
 0x35e   :  { %v829_v55 = vpop.permute.xlu0 %828 }
 0x35f   :  { %v833_v56 = vsel %vm625_vm10, %v832_v54, %v829_v55 }
 0x360   :  { %1079 = vmatmul.mubr.f32.vlgmr.msra.gmra.mrb[0].mxu0 %v833_v56 }
 0x433   :  { %v923_v59 = vpop.f32.mrb[0].mxu0 }
 0x434   :  { %v924_v60 = vadd.f32 %v968_v58, %v923_v59  ;;  %v1080_v61 = vpop.f32.mrb[1].mxu0 }
 0x436   :  { %v927_v6 = vmax.f32 %v924_v60, 0.0 }
 0x438   :  { %v935_v63 = vmul.f32 %v969_v62, %v927_v6 }
 0x43a   :  { %v936_v0 = vsel %vm386_vm12, %v935_v63, 0.0 }
 0x43b   :  { %937 = vadd.xlane.f32.xlu1 %v936_v0 }
 0x4c8   :  { %v938_v2 = vpop.xlane.xlu1 %937 }
 0x4c9   :  { %v946_v3 = vadd.f32 %v970_v1, %v938_v2 }
 0x4cb   :  { %v971_v10 = vmul.f32 -1.442695, %v946_v3 }
 0x4cd   :  { %1145 = vpow2.f32 %v971_v10 }
 0x4d7   :  { %v1146_v5 = vpop.eup %1145 }
 0x4d8   :  { %v950_v7 = vadd.f32 1.0, %v1146_v5 }
 0x4da   :  { %1147 = vrcp.f32 %v950_v7 }
 0x4e4   :  { %v1148_v4 = vpop.eup %1147 }
 0x4e5   :  { %954 = vst.msk [vmem:[%s1497_s9] sm:$0x3] %vm953_vm13, %v1148_v4 }

</bundles_post_ra>
